<compile_context>
chip_gen: v6e
topology: v6e:2x2x1
jax: 0.10.0
libtpu: 0.0.40
codegen_flags: <defaults>
</compile_context>

<pallas_src>
import math
import functools

import jax
import jax.numpy as jnp
from jax import lax
from jax.experimental import pallas as pl
from jax.experimental.pallas import tpu as pltpu


def _equal_linear_kernel(x_ref, w_ref, b_ref, o_ref, acc_ref, *, scale, mxu_dtype):
    # x_ref: (tile_m, tile_k)  w_ref: (tile_n, tile_k)  b_ref: (1, tile_n)
    # o_ref: (tile_m, tile_n)  acc_ref: (tile_m, tile_n) f32 scratch
    k = pl.program_id(2)

    @pl.when(k == 0)
    def _():
        acc_ref[...] = jnp.zeros_like(acc_ref)

    x = x_ref[...]
    w = w_ref[...]
    if mxu_dtype is not None:          # optional bf16 MXU path, f32 accumulate
        x = x.astype(mxu_dtype)
        w = w.astype(mxu_dtype)

    # x @ W^T: contract the last dim of both operands (weight kept in its
    # native (out_dim, in_dim) layout -> no wrapper transpose needed).
    acc_ref[...] += lax.dot_general(
        x, w,
        dimension_numbers=(((1,), (1,)), ((), ())),
        preferred_element_type=jnp.float32)

    @pl.when(k == pl.num_programs(2) - 1)
    def _():
        # Equal_Linear scale folded here (one multiply per output element)
        # instead of rescaling the weight block every grid step.
        o_ref[...] = (acc_ref[...] * scale
                      + b_ref[...].astype(jnp.float32)).astype(o_ref.dtype)


def _round_up(v, mult):
    return -(-v // mult) * mult


def _num_tensorcores():
    """Best-effort TC-per-chip count (2 on v7x, 1 on v5e/v6e)."""
    try:
        dev = jax.devices()[0]
        n = int(getattr(dev, "num_cores", 1) or 1)
        return min(max(n, 1), 2)
    except Exception:
        return 1


def _choose_tile_n(out_dim):
    if out_dim <= 256:
        return out_dim                       # full dim (always a legal block)
    for tn in (512, 256, 128):               # MXU-aligned, prefer exact divisor
        if out_dim % tn == 0:
            return tn
    return 256                               # ragged last N block (writes masked)


def _choose_tile_k(in_dim):
    if in_dim <= 1024:
        return in_dim                        # single K step, no accumulator churn
    for tk in (512, 256, 128):               # only exact divisors: no garbage in acc
        if in_dim % tk == 0:
            return tk
    return in_dim


def _choose_tile_m(m, num_cores, tile_m_max=512):
    m8 = _round_up(m, 8)
    if m8 <= tile_m_max:
        if num_cores >= 2 and m8 >= 16:
            # Split small inputs into 2 row tiles only on multi-TC chips (v7x).
            return _round_up(-(-m // 2), 8)
        return m8                            # single-TC: one large tile, no overhead
    return tile_m_max


def equal_linear_forward(x, weight, bias=None, *, mxu_dtype=None, tile_m_max=512):
    """Equal_Linear forward.
    x: (..., in_dim); weight: (out_dim, in_dim); bias: (out_dim,) or None.
    mxu_dtype: optional (e.g. jnp.bfloat16) cast at the MXU input; accumulation
    and bias add stay f32.
    """
    *lead, in_dim = x.shape
    out_dim, in_dim_w = weight.shape
    assert in_dim_w == in_dim
    scale = 1.0 / math.sqrt(in_dim)

    m = 1
    for d in lead:
        m *= int(d)
    x2d = x.reshape(m, in_dim)               # collapse leading dims (no copy)

    if bias is None:
        b = jnp.zeros((1, out_dim), dtype=jnp.float32)
    else:
        b = bias.reshape(1, out_dim).astype(jnp.float32)

    nb = _choose_tile_n(out_dim)
    kb = _choose_tile_k(in_dim)
    tm = _choose_tile_m(m, _num_tensorcores(), tile_m_max)

    # VMEM budget: 2x buffers for x/w/b/out streams + the f32 accumulator.
    dx = jnp.dtype(x.dtype).itemsize
    dw = jnp.dtype(weight.dtype).itemsize

    def vmem_est(tm_):
        return (2 * tm_ * kb * dx            # x tiles (double-buffered)
                + 2 * nb * kb * dw           # weight tiles
                + 2 * nb * 4                 # bias tiles
                + 2 * tm_ * nb * dx          # output tiles
                + tm_ * nb * 4)              # accumulator scratch

    while vmem_est(tm) > 24 * 1024 * 1024 and tm > 64:
        tm = max(8, _round_up(tm // 2, 8))   # shrink rows if K can't be tiled

    # Explicit scoped-VMEM budget: 2x headroom, kept under v7x's 64 MiB/TC.
    vmem_limit = int(min(max(2 * vmem_est(tm), 32 << 20), 48 << 20))

    grid = (pl.cdiv(m, tm), pl.cdiv(out_dim, nb), pl.cdiv(in_dim, kb))

    out2d = pl.pallas_call(
        functools.partial(_equal_linear_kernel, scale=scale, mxu_dtype=mxu_dtype),
        out_shape=jax.ShapeDtypeStruct((m, out_dim), x.dtype),
        grid_spec=pltpu.PrefetchScalarGridSpec(
            num_scalar_prefetch=0,
            grid=grid,
            in_specs=[
                pl.BlockSpec((tm, kb), lambda i, j, k: (i, k)),   # x rows
                pl.BlockSpec((nb, kb), lambda i, j, k: (j, k)),   # W tile (native layout)
                pl.BlockSpec((1, nb), lambda i, j, k: (0, j)),    # bias tile
            ],
            out_specs=pl.BlockSpec((tm, nb), lambda i, j, k: (i, j)),
            scratch_shapes=[pltpu.VMEM((tm, nb), jnp.float32)],
        ),
        compiler_params=pltpu.CompilerParams(
            dimension_semantics=("parallel", "parallel", "arbitrary"),
            vmem_limit_bytes=vmem_limit),
    )(x2d, weight, b)

    return out2d.reshape(*lead, out_dim)


def init_params(key, in_dim, out_dim, bias=True):
    """Matches Equal_Linear init: weight ~ randn(out_dim, in_dim), bias = 0."""
    weight = jax.random.normal(key, (out_dim, in_dim), dtype=jnp.float32)
    b = jnp.zeros((out_dim,), jnp.float32) if bias else None
    return weight, b


def equal_linear_ref(x, weight, bias=None):
    """Pure-JAX reference mirroring the PyTorch forward."""
    in_dim = x.shape[-1]
    scale = 1.0 / math.sqrt(in_dim)
    out = jnp.einsum("...k,nk->...n", x, weight * scale)
    if bias is not None:
        out = out + bias
    return out


if __name__ == "__main__":
    key = jax.random.PRNGKey(0)
    kx, kw = jax.random.split(key)

    batch, seq, in_dim, out_dim = 2, 8, 32, 32
    x = jax.random.normal(kx, (batch, seq, in_dim), dtype=jnp.float32)
    weight, bias = init_params(kw, in_dim, out_dim, bias=True)

    out = equal_linear_forward(x, weight, bias)
    out = jax.block_until_ready(out)

    ref = equal_linear_ref(x, weight, bias)
    assert out.shape == (batch, seq, out_dim)
    assert jnp.allclose(out, ref, atol=1e-5, rtol=1e-5)

    print("KERNEL_OK")
</pallas_src>

<mosaic_0001>
module attributes {stable_mosaic.version = 11 : i64} {
  func.func @_equal_linear_kernel(%arg0: i32, %arg1: i32, %arg2: i32, %arg3: memref<16x32xf32, #tpu.memory_space<vmem>>, %arg4: memref<32x32xf32, #tpu.memory_space<vmem>>, %arg5: memref<1x32xf32, #tpu.memory_space<vmem>>, %arg6: memref<16x32xf32, #tpu.memory_space<vmem>>, %arg7: memref<16x32xf32, #tpu.memory_space<vmem>>) attributes {dimension_semantics = [#tpu.dimension_semantics<parallel>, #tpu.dimension_semantics<parallel>, #tpu.dimension_semantics<arbitrary>], iteration_bounds = array<i64: 1, 1, 1>, scalar_prefetch = 0 : i64, scratch_operands = 1 : i64, tpu.core_type = #tpu.core_type<tc>, window_params = [{transform_indices = @transform_0, window_bounds = array<i64: 16, 32>}, {transform_indices = @transform_1, window_bounds = array<i64: 32, 32>}, {transform_indices = @transform_2, window_bounds = array<i64: 1, 32>}, {transform_indices = @transform_3, window_bounds = array<i64: 16, 32>}]} {
    %c0_i32 = arith.constant 0 : i32
    %0 = arith.cmpi eq, %arg2, %c0_i32 : i32
    %1 = arith.extui %0 : i1 to i32
    %c0_i32_0 = arith.constant 0 : i32
    %2 = arith.cmpi ne, %1, %c0_i32_0 : i32
    scf.if %2 {
      %cst_10 = arith.constant 0.000000e+00 : f32
      %12 = vector.broadcast %cst_10 : f32 to vector<16x32xf32>
      %c0_11 = arith.constant 0 : index
      %c0_12 = arith.constant 0 : index
      %13 = vector.load %arg7[%c0_11, %c0_12] : memref<16x32xf32, #tpu.memory_space<vmem>>, vector<16x32xf32>
      tpu.vector_store %arg7[%c0_11, %c0_12], %12 {strides = array<i32>} : memref<16x32xf32, #tpu.memory_space<vmem>>, vector<16x32xf32>,
    } else {
    }
    %c0 = arith.constant 0 : index
    %c0_1 = arith.constant 0 : index
    %3 = vector.load %arg3[%c0, %c0_1] : memref<16x32xf32, #tpu.memory_space<vmem>>, vector<16x32xf32>
    %c0_2 = arith.constant 0 : index
    %c0_3 = arith.constant 0 : index
    %4 = vector.load %arg4[%c0_2, %c0_3] : memref<32x32xf32, #tpu.memory_space<vmem>>, vector<32x32xf32>
    %c0_4 = arith.constant 0 : index
    %c0_5 = arith.constant 0 : index
    %5 = vector.load %arg7[%c0_4, %c0_5] : memref<16x32xf32, #tpu.memory_space<vmem>>, vector<16x32xf32>
    %cst = arith.constant dense<0.000000e+00> : vector<16x32xf32>
    %6 = tpu.matmul %3, %4, %cst {dimension_numbers = #tpu.dot_dimension_numbers<[1], [1], [0], [0], [0, 0, 1, 0], [], []>} : vector<16x32xf32>, vector<32x32xf32>, vector<16x32xf32> -> vector<16x32xf32>
    %7 = arith.addf %5, %6 : vector<16x32xf32>
    %c0_6 = arith.constant 0 : index
    %c0_7 = arith.constant 0 : index
    %8 = vector.load %arg7[%c0_6, %c0_7] : memref<16x32xf32, #tpu.memory_space<vmem>>, vector<16x32xf32>
    tpu.vector_store %arg7[%c0_6, %c0_7], %7 {strides = array<i32>} : memref<16x32xf32, #tpu.memory_space<vmem>>, vector<16x32xf32>,
    %c0_i32_8 = arith.constant 0 : i32
    %9 = arith.cmpi eq, %arg2, %c0_i32_8 : i32
    %10 = arith.extui %9 : i1 to i32
    %c0_i32_9 = arith.constant 0 : i32
    %11 = arith.cmpi ne, %10, %c0_i32_9 : i32
    scf.if %11 {
      %c0_10 = arith.constant 0 : index
      %c0_11 = arith.constant 0 : index
      %12 = vector.load %arg7[%c0_10, %c0_11] : memref<16x32xf32, #tpu.memory_space<vmem>>, vector<16x32xf32>
      %cst_12 = arith.constant 0.176776692 : f32
      %13 = vector.broadcast %cst_12 : f32 to vector<16x32xf32>
      %14 = arith.mulf %12, %13 : vector<16x32xf32>
      %c0_13 = arith.constant 0 : index
      %c0_14 = arith.constant 0 : index
      %15 = vector.load %arg5[%c0_13, %c0_14] : memref<1x32xf32, #tpu.memory_space<vmem>>, vector<1x32xf32>
      %16 = vector.broadcast %15 : vector<1x32xf32> to vector<16x32xf32>
      %17 = arith.addf %14, %16 : vector<16x32xf32>
      %c0_15 = arith.constant 0 : index
      %c0_16 = arith.constant 0 : index
      %18 = vector.load %arg6[%c0_15, %c0_16] : memref<16x32xf32, #tpu.memory_space<vmem>>, vector<16x32xf32>
      tpu.vector_store %arg6[%c0_15, %c0_16], %17 {strides = array<i32>} : memref<16x32xf32, #tpu.memory_space<vmem>>, vector<16x32xf32>,
    } else {
    }
    return
  }
  func.func @transform_0(%arg0: i32, %arg1: i32, %arg2: i32) -> (i32, i32) {
    %c0_i32 = arith.constant 0 : i32
    return %arg0, %arg2 : i32, i32
  }
  func.func @transform_1(%arg0: i32, %arg1: i32, %arg2: i32) -> (i32, i32) {
    %c0_i32 = arith.constant 0 : i32
    return %arg1, %arg2 : i32, i32
  }
  func.func @transform_2(%arg0: i32, %arg1: i32, %arg2: i32) -> (i32, i32) {
    %c0_i32 = arith.constant 0 : i32
    %c0_i32_0 = arith.constant 0 : i32
    return %c0_i32, %arg1 : i32, i32
  }
  func.func @transform_3(%arg0: i32, %arg1: i32, %arg2: i32) -> (i32, i32) {
    %c0_i32 = arith.constant 0 : i32
    return %arg0, %arg1 : i32, i32
  }
}

</mosaic_0001>

<bundles_post_ra>
// kernel: tpu_custom_call.1
= control target key start
LH: loop header
LB: loop body
LE: loop exit
PB: predicated region body
PF: predicated region fallthrough
CT: control target
= control target key end

     0   :  { %8 = vsyncpa [#allocation4], 0  ;;  %s351_s0 = inlined_call_operand.hbm [shape: f32[16,32], index: 0, kind: input, shape index: {}]   ;;  %s352_s1 = inlined_call_operand.hbm [shape: f32[32,32], index: 1, kind: input, shape index: {}]   ;;  %s353_s2 = inlined_call_operand.vmem [shape: f32[1,32], index: 2, kind: input, shape index: {}]   ;;  %s354_s3 = inlined_call_operand.hbm [shape: f32[16,32], index: 3, kind: output, shape index: {}]  }
   0x1   :  { %9 = vsyncpa [#allocation7], 0 }
   0x2   :  { %10 = vsyncpa [#allocation5], 0  ;;  %s288_s12 = smov [#allocation3]  }
   0x3   :  { %s16_s13 = sshll.u32 %s288_s12, 4  ;;  %s17_s13 = int_to_ptr.vmem [resolvable:$true] %s16_s13 }
   0x4   :  { %s230_s14 = scalar_lea.vmem %s17_s13, 256  ;;  %p235_p1 = scmp.lt.s32.totalorder %s17_s13, %s17_s13 }
   0x5   :  { %p231_p0 = scmp.ne.s32.totalorder %s17_s13, %s230_s14  ;;  %p236_p2 = scmp.lt.s32.totalorder %s230_s14, %s230_s14 }
   0x7   :  { %p237_p3 = por %p236_p2, %p235_p1 }
   0x9   :  { %p238_p4 = pnand %p237_p3, %p231_p0 }
   0xb   :  { %241 = shalt.err (!%p238_p4)
}
   0xc   :  { %s289_s15 = smov 128   ;;  %s290_s16 = smov 8  }
   0xd   :  { %22 = dma.hbm_to_vmem [thread:$0]  %s351_s0, 256, %s17_s13, [#allocation4], %s289_s15, %s289_s15, %s290_s16  }
   0xe   :  { %s291_s19 = smov [#allocation6]  }
   0xf   :  { %s28_s20 = sshll.u32 %s291_s19, 4  ;;  %s29_s20 = int_to_ptr.vmem [resolvable:$true] %s28_s20 }
  0x10   :  { %s250_s21 = scalar_lea.vmem %s29_s20, 512  ;;  %p255_p6 = scmp.lt.s32.totalorder %s29_s20, %s29_s20 }
  0x11   :  { %p251_p5 = scmp.ne.s32.totalorder %s29_s20, %s250_s21  ;;  %p256_p7 = scmp.lt.s32.totalorder %s250_s21, %s250_s21 }
  0x13   :  { %p257_p8 = por %p256_p7, %p255_p6 }
  0x15   :  { %p258_p9 = pnand %p257_p8, %p251_p5 }
  0x17   :  { %261 = shalt.err (!%p258_p9)
}
  0x18   :  { %34 = dma.hbm_to_vmem [thread:$0]  %s352_s1, 512, %s29_s20, [#allocation7], %s289_s15, %s289_s15, %s290_s16  }
  0x19   :  { %282 = dma.done.wait [#allocation4], 256  }
  0x1a   :  { %283 = vsyncadd [#allocation4], 4294967040 }
  0x1b   :  { %284 = dma.done.wait [#allocation7], 512  }
  0x1c   :  { %285 = vsyncadd [#allocation7], 4294966784  ;;  %vm47_vm0 = vcmask 261120   ;;  %v292_v0 = vmov 0.0   ;;  %v55_v1 = vld [vmem:[#allocation6 + $0x18] sm:$0xff]  ;;  %v54_v2 = vld [vmem:[#allocation6 + $0x10] sm:$0xff] }
  0x1d   :  { %49 = vst.msk [vmem:[#allocation2 + $0x8] sm:$0xff] %vm47_vm0, %v292_v0  ;;  %48 = vst.msk [vmem:[#allocation2] sm:$0xff] %vm47_vm0, %v292_v0  ;;  %205 = vmatprep.subr.msk.mxu0 %vm47_vm0, %v55_v1  ;;  %v50_v3 = vld [vmem:[#allocation3] sm:$0xff]  ;;  %v53_v4 = vld [vmem:[#allocation6 + $0x8] sm:$0xff]  ;;  %s293_s24 = smov [#allocation8]  }
  0x1e   :  { %206 = vmatpush3.xpose.msk.msra.mxu0 %vm47_vm0, %v55_v1  ;;  %213 = vmatprep.mubr.msk.f32.mxu0 %vm47_vm0, %v50_v3  ;;  %v52_v5 = vld [vmem:[#allocation6] sm:$0xff]  ;;  %v51_v6 = vld [vmem:[#allocation3 + $0x8] sm:$0xff]  ;;  %s179_s25 = sshll.u32 %s293_s24, 4  ;;  %s180_s25 = int_to_ptr.vmem [resolvable:$true] %s179_s25 }
  0x1f   :  { %207 = vmatprep.subr.msk.mxu0 %vm47_vm0, %v54_v2  ;;  %v198_v14 = vld [vmem:[%s353_s2] ss:$0 sm:$0xff]  ;;  %s262_s26 = scalar_lea.vmem %s180_s25, 256  ;;  %p267_p11 = scmp.lt.s32.totalorder %s180_s25, %s180_s25 }
  0x20   :  { %p263_p10 = scmp.ne.s32.totalorder %s180_s25, %s262_s26  ;;  %p268_p12 = scmp.lt.s32.totalorder %s262_s26, %s262_s26 }
  0x22   :  { %208 = vmatpush3.xpose.msk.msra.mxu0 %vm47_vm0, %v54_v2  ;;  %p269_p13 = por %p268_p12, %p267_p11 }
  0x23   :  { %209 = vmatprep.subr.msk.mxu0 %vm47_vm0, %v53_v4 }
  0x24   :  { %v57_v7 = vld [vmem:[#allocation2 + $0x8] sm:$0xff]  ;;  %v56_v9 = vld [vmem:[#allocation2] sm:$0xff]  ;;  %p270_p0 = pnand %p269_p13, %p263_p10 }
  0x26   :  { %210 = vmatpush3.xpose.msk.msra.mxu0 %vm47_vm0, %v53_v4 }
  0x27   :  { %211 = vmatprep.subr.msk.mxu0 %vm47_vm0, %v52_v5 }
  0x2a   :  { %212 = vmatpush3.xpose.msk.msra.mxu0 %vm47_vm0, %v52_v5 }
  0x2d   :  { %214 = vmatmul.mubr.msk.f32.vlgmr.msra.gmra.mxu0 %vm47_vm0, %v51_v6 }
  0xed   :  { %v215_v8 = vpop.f32.mrf.mxu0 }
  0xee   :  { %v153_v10 = vadd.f32 %v215_v8, %v57_v7 }
  0xef   :  { %v143_v11 = vpop.f32.mrf.mxu0 }
  0xf0   :  { %155 = vst.msk [vmem:[#allocation2 + $0x8] sm:$0xff] %vm47_vm0, %v153_v10  ;;  %v152_v12 = vadd.f32 %v143_v11, %v56_v9 }
  0xf2   :  { %154 = vst.msk [vmem:[#allocation2] sm:$0xff] %vm47_vm0, %v152_v12 }
  0xf7   :  { %v160_v13 = vld [vmem:[#allocation2 + $0x8] sm:$0xff] }
  0xf8   :  { %v162_v15 = vmul.f32 0.17677669, %v160_v13 }
  0xf9   :  { %v159_v16 = vld [vmem:[#allocation2] sm:$0xff] }
  0xfa   :  { %v161_v17 = vmul.f32 0.17677669, %v159_v16  ;;  %v171_v18 = vadd.f32 %v198_v14, %v162_v15 }
  0xfc   :  { %v170_v19 = vadd.f32 %v198_v14, %v161_v17  ;;  %173 = vst.msk [vmem:[#allocation8 + $0x8] sm:$0xff] %vm47_vm0, %v171_v18 }
  0xfe   :  { %172 = vst.msk [vmem:[#allocation8] sm:$0xff] %vm47_vm0, %v170_v19 }
  0xff   :  { %273 = shalt.err (!%p270_p0)
}
 0x100   :  { %185 = dma.vmem_to_hbm [thread:$0]  %s180_s25, 256, %s354_s3, [#allocation5], %s289_s15, %s289_s15, %s290_s16  }
 0x101   :  { %286 = dma.done.wait [#allocation5], 256  }
 0x102   :  { %287 = vsyncadd [#allocation5], 4294967040 }
 0x103   :  { %189 = vsyncpa [#allocation4], 1 }
 0x104   :  { %190 = vsyncpa [#allocation7], 1 }
 0x105   :  { %191 = vsyncpa [#allocation5], 1 }

</bundles_post_ra>
